<compile_context>
chip_gen: v7x
topology: tpu7x:2x2x1
jax: 0.10.0
libtpu: 0.0.40
codegen_flags: <defaults>
</compile_context>

<pallas_src>
import functools

import jax
import jax.numpy as jnp
from jax.experimental import pallas as pl
from jax.experimental.pallas import tpu as pltpu

VMEM_SPEC = pl.BlockSpec(memory_space=pltpu.MemorySpace.VMEM)


# ----------------------------------------------------------------------------
# Fused LFR_ANN forward kernel (single invocation per batch tile).
#   pre = [ z | xp_lin | y_lin ] = h @ W1h + u @ W1u + [bz | bx | by]
#   w   = tanh(z)
#   out = [ xp | y ] = [xp_lin | y_lin] + w @ W2
# ----------------------------------------------------------------------------
def _lfr_kernel(n_neurons, n_state, compute_dtype,
                h_ref, u_ref, w1h_ref, w1u_ref, b1_ref, w2_ref,
                xp_ref, y_ref):
    h = h_ref[...].astype(compute_dtype)
    u = u_ref[...].astype(compute_dtype)

    # One wide GEMM (N = n_neurons + n_state + n_out) instead of 6 narrow ones.
    pre = (jnp.dot(h, w1h_ref[...], preferred_element_type=jnp.float32)
           + jnp.dot(u, w1u_ref[...], preferred_element_type=jnp.float32)
           + b1_ref[...])

    w = jnp.tanh(pre[:, :n_neurons])          # activation = Tanh (EUP slot)
    lin = pre[:, n_neurons:]                  # [xp_lin | y_lin]

    out = lin + jnp.dot(w.astype(compute_dtype), w2_ref[...],
                        preferred_element_type=jnp.float32)

    # Output lane-widths are n_state=8 / n_out=5 (< 128) -> masked stores, but
    # total output bytes are tiny so this is not on the critical path.
    # TODO(synk): for very large B a transposed (feature-on-sublane, B-on-lane)
    # layout would give unmasked lane-dense stores at the cost of wrapper
    # transposes; not worth it at these sizes.
    xp_ref[...] = out[:, :n_state]
    y_ref[...] = out[:, n_state:]


# ----------------------------------------------------------------------------
# Host-side (one-time) parameter packing: build the concatenated weight blocks.
# ----------------------------------------------------------------------------
def pack_lfr_params(p, compute_dtype=jnp.float32):
    """compute_dtype=jnp.bfloat16 recommended on v6e/v7x (f32 MXU accumulation kept)."""
    w1h = jnp.concatenate([p["Cz"].T, p["A"].T, p["Cy"].T], axis=1).astype(compute_dtype)
    w1u = jnp.concatenate([p["Dzu"].T, p["Bu"].T, p["Dyu"].T], axis=1).astype(compute_dtype)
    b1 = jnp.concatenate([p["bz"], p["bx"], p["by"]]).reshape(1, -1).astype(jnp.float32)
    w2 = jnp.concatenate([p["Bw"].T, p["Dyw"].T], axis=1).astype(compute_dtype)
    return {
        "w1h": w1h, "w1u": w1u, "b1": b1, "w2": w2,
        "n_state": p["A"].shape[0],
        "n_in": p["Bu"].shape[1],
        "n_out": p["Cy"].shape[0],
        "n_neurons": p["Cz"].shape[0],
    }


def lfr_ann_forward(hidden_state, u, packed, *, batch_tile=None):
    """Returns (xp, y) — same semantics as LFR_ANN.forward."""
    ns, no, nw = packed["n_state"], packed["n_out"], packed["n_neurons"]
    B = hidden_state.shape[0]
    compute_dtype = packed["w1h"].dtype
    kernel = functools.partial(_lfr_kernel, nw, ns, compute_dtype)
    args = (hidden_state, u, packed["w1h"], packed["w1u"], packed["b1"], packed["w2"])
    out_shape = (jax.ShapeDtypeStruct((B, ns), jnp.float32),
                 jax.ShapeDtypeStruct((B, no), jnp.float32))

    if batch_tile is None or B <= batch_tile or B % batch_tile != 0:
        # Small batch: single grid-less invocation, everything in VMEM.
        return pl.pallas_call(
            kernel,
            out_shape=out_shape,
            in_specs=[VMEM_SPEC] * len(args),
            out_specs=(VMEM_SPEC, VMEM_SPEC),
        )(*args)

    # Large batch: tile over batch with a 'parallel' axis (both v7x TCs busy).
    # Weight blocks have a constant index_map -> fetched once, reused each step.
    tb = batch_tile
    in_specs = [
        pl.BlockSpec((tb, hidden_state.shape[1]), lambda i: (i, 0)),
        pl.BlockSpec((tb, u.shape[1]), lambda i: (i, 0)),
        pl.BlockSpec(packed["w1h"].shape, lambda i: (0, 0)),
        pl.BlockSpec(packed["w1u"].shape, lambda i: (0, 0)),
        pl.BlockSpec(packed["b1"].shape, lambda i: (0, 0)),
        pl.BlockSpec(packed["w2"].shape, lambda i: (0, 0)),
    ]
    out_specs = (pl.BlockSpec((tb, ns), lambda i: (i, 0)),
                 pl.BlockSpec((tb, no), lambda i: (i, 0)))
    return pl.pallas_call(
        kernel,
        out_shape=out_shape,
        grid=(B // tb,),
        in_specs=in_specs,
        out_specs=out_specs,
        compiler_params=pltpu.CompilerParams(dimension_semantics=("parallel",)),
    )(*args)


# ----------------------------------------------------------------------------
# Parameter init (replicates `initial_gain * torch.rand(...)`) + pure-JAX ref.
# ----------------------------------------------------------------------------
def init_lfr_params(key, n_in=6, n_state=8, n_out=5, n_neurons=64,
                    initial_gain=0.001):
    shapes = [
        ("A", (n_state, n_state)), ("Bu", (n_state, n_in)), ("Bw", (n_state, n_neurons)),
        ("Cy", (n_out, n_state)), ("Cz", (n_neurons, n_state)),
        ("Dyu", (n_out, n_in)), ("Dyw", (n_out, n_neurons)), ("Dzu", (n_neurons, n_in)),
        ("bx", (n_state,)), ("bz", (n_neurons,)), ("by", (n_out,)),
    ]
    params = {}
    for name, shape in shapes:
        key, sub = jax.random.split(key)
        params[name] = initial_gain * jax.random.uniform(sub, shape, jnp.float32)
    return params, key


def lfr_ann_reference(h, u, p):
    z = h @ p["Cz"].T + u @ p["Dzu"].T + p["bz"]
    w = jnp.tanh(z)
    xp = h @ p["A"].T + u @ p["Bu"].T + w @ p["Bw"].T + p["bx"]
    y = h @ p["Cy"].T + u @ p["Dyu"].T + w @ p["Dyw"].T + p["by"]
    return xp, y


if __name__ == "__main__":
    # LFR_ANN defaults: n_in=6, n_state=8, n_out=5, n_neurons=64, Tanh, gain=1e-3
    n_in, n_state, n_out, n_neurons = 6, 8, 5, 64

    key = jax.random.PRNGKey(0)
    params, key = init_lfr_params(key, n_in, n_state, n_out, n_neurons)
    packed = pack_lfr_params(params)          # use compute_dtype=jnp.bfloat16 on v6e/v7x

    # --- small batch (B=2): fully fused, grid-less path --------------------
    key, kh, ku = jax.random.split(key, 3)
    B = 2
    hidden_state = jax.random.normal(kh, (B, n_state), jnp.float32)
    u = jax.random.normal(ku, (B, n_in), jnp.float32)

    xp, y = lfr_ann_forward(hidden_state, u, packed)
    jax.block_until_ready((xp, y))
    assert xp.shape == (B, n_state) and y.shape == (B, n_out)
    xr, yr = lfr_ann_reference(hidden_state, u, params)
    assert bool(jnp.allclose(xp, xr, atol=1e-5, rtol=1e-3)), "xp mismatch"
    assert bool(jnp.allclose(y, yr, atol=1e-5, rtol=1e-3)), "y mismatch"

    # --- larger batch: batch-tiled 'parallel' grid path ---------------------
    key, kh, ku = jax.random.split(key, 3)
    B2 = 256
    h2 = jax.random.normal(kh, (B2, n_state), jnp.float32)
    u2 = jax.random.normal(ku, (B2, n_in), jnp.float32)
    xp2, y2 = lfr_ann_forward(h2, u2, packed, batch_tile=128)
    jax.block_until_ready((xp2, y2))
    assert xp2.shape == (B2, n_state) and y2.shape == (B2, n_out)
    xr2, yr2 = lfr_ann_reference(h2, u2, params)
    assert bool(jnp.allclose(xp2, xr2, atol=1e-5, rtol=1e-3)), "xp (tiled) mismatch"
    assert bool(jnp.allclose(y2, yr2, atol=1e-5, rtol=1e-3)), "y (tiled) mismatch"

    print("KERNEL_OK")
</pallas_src>

<mosaic_0001>
module attributes {stable_mosaic.version = 11 : i64} {
  func.func @_lfr_kernel(%arg0: memref<2x8xf32, #tpu.memory_space<vmem>>, %arg1: memref<2x6xf32, #tpu.memory_space<vmem>>, %arg2: memref<8x77xf32, #tpu.memory_space<vmem>>, %arg3: memref<6x77xf32, #tpu.memory_space<vmem>>, %arg4: memref<1x77xf32, #tpu.memory_space<vmem>>, %arg5: memref<64x13xf32, #tpu.memory_space<vmem>>, %arg6: memref<2x8xf32, #tpu.memory_space<vmem>>, %arg7: memref<2x5xf32, #tpu.memory_space<vmem>>) attributes {dimension_semantics = [], scalar_prefetch = 0 : i64, scratch_operands = 0 : i64, tpu.core_type = #tpu.core_type<tc>} {
    %c0 = arith.constant 0 : index
    %c0_0 = arith.constant 0 : index
    %0 = vector.load %arg0[%c0, %c0_0] : memref<2x8xf32, #tpu.memory_space<vmem>>, vector<2x8xf32>
    %c0_1 = arith.constant 0 : index
    %c0_2 = arith.constant 0 : index
    %1 = vector.load %arg1[%c0_1, %c0_2] : memref<2x6xf32, #tpu.memory_space<vmem>>, vector<2x6xf32>
    %c0_3 = arith.constant 0 : index
    %c0_4 = arith.constant 0 : index
    %2 = vector.load %arg2[%c0_3, %c0_4] : memref<8x77xf32, #tpu.memory_space<vmem>>, vector<8x77xf32>
    %cst = arith.constant dense<0.000000e+00> : vector<2x77xf32>
    %3 = tpu.matmul %0, %2, %cst {dimension_numbers = #tpu.dot_dimension_numbers<[1], [0], [0], [1], [0, 0, 1, 1], [], []>} : vector<2x8xf32>, vector<8x77xf32>, vector<2x77xf32> -> vector<2x77xf32>
    %c0_5 = arith.constant 0 : index
    %c0_6 = arith.constant 0 : index
    %4 = vector.load %arg3[%c0_5, %c0_6] : memref<6x77xf32, #tpu.memory_space<vmem>>, vector<6x77xf32>
    %cst_7 = arith.constant dense<0.000000e+00> : vector<2x77xf32>
    %5 = tpu.matmul %1, %4, %cst_7 {dimension_numbers = #tpu.dot_dimension_numbers<[1], [0], [0], [1], [0, 0, 1, 1], [], []>} : vector<2x6xf32>, vector<6x77xf32>, vector<2x77xf32> -> vector<2x77xf32>
    %6 = arith.addf %3, %5 : vector<2x77xf32>
    %c0_8 = arith.constant 0 : index
    %c0_9 = arith.constant 0 : index
    %7 = vector.load %arg4[%c0_8, %c0_9] : memref<1x77xf32, #tpu.memory_space<vmem>>, vector<1x77xf32>
    %8 = vector.broadcast %7 : vector<1x77xf32> to vector<2x77xf32>
    %9 = arith.addf %6, %8 : vector<2x77xf32>
    %10 = vector.extract_strided_slice %9 {offsets = [0, 0], sizes = [2, 64], strides = [1, 1]} : vector<2x77xf32> to vector<2x64xf32>
    %11 = math.tanh %10 : vector<2x64xf32>
    %12 = vector.extract_strided_slice %9 {offsets = [0, 64], sizes = [2, 13], strides = [1, 1]} : vector<2x77xf32> to vector<2x13xf32>
    %c0_10 = arith.constant 0 : index
    %c0_11 = arith.constant 0 : index
    %13 = vector.load %arg5[%c0_10, %c0_11] : memref<64x13xf32, #tpu.memory_space<vmem>>, vector<64x13xf32>
    %cst_12 = arith.constant dense<0.000000e+00> : vector<2x13xf32>
    %14 = tpu.matmul %11, %13, %cst_12 {dimension_numbers = #tpu.dot_dimension_numbers<[1], [0], [0], [1], [0, 0, 1, 1], [], []>} : vector<2x64xf32>, vector<64x13xf32>, vector<2x13xf32> -> vector<2x13xf32>
    %15 = arith.addf %12, %14 : vector<2x13xf32>
    %16 = vector.extract_strided_slice %15 {offsets = [0, 0], sizes = [2, 8], strides = [1, 1]} : vector<2x13xf32> to vector<2x8xf32>
    %c0_13 = arith.constant 0 : index
    %c0_14 = arith.constant 0 : index
    %17 = vector.load %arg6[%c0_13, %c0_14] : memref<2x8xf32, #tpu.memory_space<vmem>>, vector<2x8xf32>
    tpu.vector_store %arg6[%c0_13, %c0_14], %16 {strides = array<i32>} : memref<2x8xf32, #tpu.memory_space<vmem>>, vector<2x8xf32>,
    %18 = vector.extract_strided_slice %15 {offsets = [0, 8], sizes = [2, 5], strides = [1, 1]} : vector<2x13xf32> to vector<2x5xf32>
    %c0_15 = arith.constant 0 : index
    %c0_16 = arith.constant 0 : index
    %19 = vector.load %arg7[%c0_15, %c0_16] : memref<2x5xf32, #tpu.memory_space<vmem>>, vector<2x5xf32>
    tpu.vector_store %arg7[%c0_15, %c0_16], %18 {strides = array<i32>} : memref<2x5xf32, #tpu.memory_space<vmem>>, vector<2x5xf32>,
    return
  }
}

</mosaic_0001>

<bundles_post_ra>
// kernel: tpu_custom_call.1
= control target key start
LH: loop header
LB: loop body
LE: loop exit
PB: predicated region body
PF: predicated region fallthrough
CT: control target
= control target key end

     0   :  { %13 = vsyncpa [#allocation3], 0  ;;  %vm35_vm0 = vcmask 1045504   ;;  %vm31_vm1 = vcmask 48128   ;;  %v434_v1 = vmov 0.0   ;;  %vm435_vm2 = vmmov 0   ;;  %s544_s0 = inlined_call_operand.vmem [shape: f32[2,8], index: 0, kind: input, shape index: {}]   ;;  %s545_s1 = inlined_call_operand.vmem [shape: f32[2,6], index: 1, kind: input, shape index: {}]   ;;  %s546_s2 = inlined_call_operand.vmem [shape: f32[8,77], index: 2, kind: input, shape index: {}]   ;;  %s547_s3 = inlined_call_operand.vmem [shape: f32[6,77], index: 3, kind: input, shape index: {}]   ;;  %s548_s4 = inlined_call_operand.vmem [shape: f32[1,77], index: 4, kind: input, shape index: {}]   ;;  %s549_s5 = inlined_call_operand.vmem [shape: f32[64,13], index: 5, kind: input, shape index: {}]   ;;  %s550_s6 = inlined_call_operand.hbm [shape: f32[2,8], index: 6, kind: output, shape index: {0}]   ;;  %s551_s7 = inlined_call_operand.hbm [shape: f32[2,5], index: 7, kind: output, shape index: {1}]  }
   0x1   :  { %v30_v0 = vld [vmem:[%s547_s3] sm:$0x3f]  ;;  %336 = vmatprep.subr.mxu1 %v434_v1  ;;  %338 = vmatprep.mubr.msk.f32.mxu1 %vm435_vm2, %v434_v1 }
   0x2   :  { %v28_v2 = vld [vmem:[%s545_s1] sm:$0x3]  ;;  %337 = vmatpush3.msk.msra.mxu1 %vm35_vm0, %v30_v0  ;;  %362 = vmatprep.mubr.msk.f32.mxu0 %vm435_vm2, %v434_v1 }
   0x3   :  { %v29_v3 = vld [vmem:[%s546_s2] sm:$0xff] }
   0x4   :  { %14 = vsyncpa [#allocation5], 0  ;;  %339 = vmatmul.mubr.msk.f32.vlgmr.msra.gmra.mrb[0].mxu1 %vm31_vm1, %v28_v2  ;;  %341 = vmatprep.subr.mxu1 %v434_v1  ;;  %v27_v4 = vld [vmem:[%s544_s0] sm:$0x3]  ;;  %vm109_vm3 = vcmask 64512   ;;  %v193_v6 = vld [vmem:[%s549_s5 + $0x8] sm:$0xff] }
   0x5   :  { %342 = vmatpush3.msra.mxu1 %v29_v3  ;;  %343 = vmatprep.mubr.msk.f32.mxu1 %vm435_vm2, %v434_v1  ;;  %v192_v5 = vld [vmem:[%s549_s5] sm:$0xff]  ;;  %v436_v8 = vmov 0.0|0.0   ;;  %v194_v9 = vld [vmem:[%s549_s5 + $0x10] sm:$0xff]  ;;  %v195_v10 = vld [vmem:[%s549_s5 + $0x18] sm:$0xff]  ;;  %vm200_vm4 = vcmask 523264   ;;  %s438_s23 = smov 56  }
   0x6   :  { %v366_v7 = vpack.c.bf16 %v193_v6, %v192_v5  ;;  %365 = vmatprep.subr.bf16.mxu0 %v436_v8  ;;  %v369_v11 = vpack.c.bf16 %v195_v10, %v194_v9  ;;  %v196_v12 = vld [vmem:[%s549_s5 + $0x20] sm:$0xff]  ;;  %v197_v13 = vld [vmem:[%s549_s5 + $0x28] sm:$0xff]  ;;  %v198_v15 = vld [vmem:[%s549_s5 + $0x30] sm:$0xff]  ;;  %s439_s24 = smov [#allocation2]   ;;  %s440_s26 = smov [#allocation4]   ;;  %vm288_vm5 = vcmask 33792  }
   0x7   :  { %v372_v14 = vpack.c.bf16 %v197_v13, %v196_v12  ;;  %v199_v16 = vld [vmem:[%s549_s5 + $0x38] sm:$0xff]  ;;  %v321_v21 = vld [vmem:[%s548_s4] ss:$0 sm:$0xff]  ;;  %s437_s5 = smov 64   ;;  %s296_s25 = sshll.u32 %s439_s24, 4  ;;  %vm283_vm6 = vcmask 58368   ;;  %s297_s25 = int_to_ptr.vmem [resolvable:$true] %s296_s25 }
   0x8   :  { %344 = vmatmul.mubr.msk.f32.vlgmr.msra.gmra.mrb[2].mxu1 %vm109_vm3, %v27_v4  ;;  %367 = vmatpush3.bf16.msra.mxu0 %v366_v7  ;;  %v375_v17 = vpack.c.bf16 %v199_v16, %v198_v15  ;;  %s306_s4 = sshll.u32 %s440_s26, 4  ;;  %s386_s27 = scalar_lea.vmem %s297_s25, 32  ;;  %s307_s4 = int_to_ptr.vmem [resolvable:$true] %s306_s4 }
   0x9   :  { %368 = vmatprep.subr.bf16.mxu0 %v436_v8  ;;  %p387_p0 = scmp.ne.s32.totalorder %s297_s25, %s386_s27  ;;  %p391_p1 = scmp.lt.s32.totalorder %s297_s25, %s297_s25 }
   0xa   :  { %p392_p2 = scmp.lt.s32.totalorder %s386_s27, %s386_s27 }
   0xc   :  { %370 = vmatpush3.bf16.msra.mxu0 %v369_v11  ;;  %p393_p3 = por %p392_p2, %p391_p1 }
   0xd   :  { %371 = vmatprep.subr.bf16.mxu0 %v436_v8 }
   0xe   :  { %p394_p4 = pnand %p393_p3, %p387_p0 }
  0x10   :  { %373 = vmatpush3.bf16.msra.mxu0 %v372_v14 }
  0x11   :  { %374 = vmatprep.subr.bf16.mxu0 %v436_v8 }
  0x14   :  { %376 = vmatpush3.bf16.msra.mxu0 %v375_v17 }
  0xd7   :  { %v105_v18 = vpop.f32.mrb[0].mxu1 }
  0xd8   :  { %v340_v19 = vpop.f32.mrb[1].mxu1 }
  0xdb   :  { %v179_v20 = vpop.f32.mrb[2].mxu1 }
  0xdc   :  { %v180_v22 = vadd.f32 %v179_v20, %v105_v18  ;;  %v345_v23 = vpop.f32.mrb[3].mxu1 }
  0xde   :  { %v190_v24 = vadd.f32 %v321_v21, %v180_v22 }
  0xe0   :  { %384 = vtanh.f32 %v190_v24 }
  0xea   :  { %v385_v25 = vpop.eup %384 }
  0xeb   :  { %363 = vmatmul.mubr.msk.f32.vlgmr.msra.gmra.mrb[0].mxu0 %vm200_vm4, %v385_v25 }
 0x1be   :  { %v270_v26 = vpop.f32.mrb[0].mxu0 }
 0x1bf   :  { %275 = vrot.lane.b32.xlu0 %v270_v26, %s437_s5  ;;  %v364_v27 = vpop.f32.mrb[1].mxu0 }
 0x231   :  { %v276_v28 = vpop.permute.xlu0 %275 }
 0x232   :  { %v278_v29 = vadd.f32 %v276_v28, %v190_v24 }
 0x234   :  { %285 = vrot.lane.b32.xlu1 %v278_v29, %s438_s23  ;;  %280 = vrot.lane.b32.xlu0 %v278_v29, %s437_s5 }
 0x2a6   :  { %v286_v30 = vpop.permute.xlu1 %285  ;;  %v281_v31 = vpop.permute.xlu0 %280 }
 0x2a7   :  { %289 = vst.msk [vmem:[#allocation4] sm:$0x3] %vm288_vm5, %v286_v30 }
 0x2a8   :  { %284 = vst.msk [vmem:[#allocation2] sm:$0x3] %vm283_vm6, %v281_v31 }
 0x2a9   :  { %397 = shalt.err (!%p394_p4)
}
 0x2aa   :  { %s398_s3 = scalar_lea.hbm %s550_s6, 32 }
 0x2ab   :  { %p399_p5 = scmp.ne.s32.totalorder %s550_s6, %s398_s3  ;;  %p402_p6 = scmp.lt.u32.totalorder %s398_s3, %s550_s6 }
 0x2ad   :  { %p404_p7 = pnand %p402_p6, %p399_p5 }
 0x2af   :  { %407 = shalt.err (!%p404_p7)
}
 0x2b0   :  { %299 = dma.vmem_to_hbm [thread:$0]  %s297_s25, 32, %s550_s6, [#allocation3]  }
 0x2b1   :  { %s408_s11 = scalar_lea.vmem %s307_s4, 32  ;;  %p413_p9 = scmp.lt.s32.totalorder %s307_s4, %s307_s4 }
 0x2b2   :  { %p409_p8 = scmp.ne.s32.totalorder %s307_s4, %s408_s11  ;;  %p414_p10 = scmp.lt.s32.totalorder %s408_s11, %s408_s11 }
 0x2b4   :  { %p415_p11 = por %p414_p10, %p413_p9 }
 0x2b6   :  { %p416_p12 = pnand %p415_p11, %p409_p8 }
 0x2b8   :  { %419 = shalt.err (!%p416_p12)
}
 0x2b9   :  { %s420_s13 = scalar_lea.hbm %s551_s7, 32 }
 0x2ba   :  { %p421_p13 = scmp.ne.s32.totalorder %s551_s7, %s420_s13  ;;  %p424_p0 = scmp.lt.u32.totalorder %s420_s13, %s551_s7 }
 0x2bc   :  { %p426_p1 = pnand %p424_p0, %p421_p13 }
 0x2be   :  { %429 = shalt.err (!%p426_p1)
}
 0x2bf   :  { %309 = dma.vmem_to_hbm [thread:$0]  %s307_s4, 32, %s551_s7, [#allocation5]  }
 0x2c0   :  { %430 = dma.done.wait [#allocation3], 32  }
 0x2c1   :  { %431 = vsyncadd [#allocation3], 4294967264 }
 0x2c2   :  { %432 = dma.done.wait [#allocation5], 32  }
 0x2c3   :  { %433 = vsyncadd [#allocation5], 4294967264 }
 0x2c4   :  { %316 = vsyncpa [#allocation3], 1 }
 0x2c5   :  { %317 = vsyncpa [#allocation5], 1 }

</bundles_post_ra>
